<compile_context>
chip_gen: v7x
topology: tpu7x:2x2x1
jax: 0.10.0
libtpu: 0.0.40
codegen_flags: <defaults>
</compile_context>

<pallas_src>
import jax
import jax.numpy as jnp
from jax import lax
from jax.experimental import pallas as pl
from jax.experimental.pallas import tpu as pltpu

TEMPERATURE = 0.1
CONTRASTIVE_WEIGHT = 0.5
CLASSIFIER_1_WEIGHT = 0.25
CLASSIFIER_2_WEIGHT = 0.25


def _ce_row_losses(logits, labels_col):
    # logits: (R, C) f32, labels_col: (R, 1) int32 -> (R, 1) per-row CE loss.
    # Assumes labels in [0, C), no ignore_index (nn.CrossEntropyLoss defaults).
    R, C = logits.shape
    class_ids = lax.broadcasted_iota(jnp.int32, (R, C), 1)
    onehot = (class_ids == labels_col).astype(jnp.float32)
    m = jnp.max(logits, axis=-1, keepdims=True)
    lse = m + jnp.log(jnp.sum(jnp.exp(logits - m), axis=-1, keepdims=True))
    picked = jnp.sum(logits * onehot, axis=-1, keepdims=True)
    return lse - picked


def _hybrid_loss_kernel(proj_ref, pred1_ref, pred2_ref,
                        plab_row_ref, plab_col_ref, lab_col_ref, out_ref):
    # -------- NT-Xent contrastive loss --------
    proj = proj_ref[...].astype(jnp.float32)                   # (B, D)
    B = proj.shape[0]

    plab_row = plab_row_ref[...]                               # (1, B) int32
    plab_col = plab_col_ref[...]                               # (B, 1) int32
    lab_col = lab_col_ref[...]                                 # (B, 1) int32

    # cosine-normalize: rsqrt (EUP) + multiply instead of sqrt + divide
    sumsq = jnp.sum(proj * proj, axis=-1, keepdims=True)
    z = proj * lax.rsqrt(jnp.maximum(sumsq, 1e-24))

    # similarity matrix z @ z.T on the MXU: bf16 operands, f32 accumulation,
    # contract feature dims directly (no transpose op).
    zb = z.astype(jnp.bfloat16)
    sim = lax.dot_general(zb, zb, dimension_numbers=(((1,), (1,)), ((), ())),
                          preferred_element_type=jnp.float32)   # (B, B)
    logits = sim * jnp.float32(1.0 / TEMPERATURE)

    same = plab_col == plab_row                                 # (B, B) bool
    row_ids = lax.broadcasted_iota(jnp.int32, (B, B), 0)
    col_ids = lax.broadcasted_iota(jnp.int32, (B, B), 1)
    pos_mask = jnp.logical_and(same, row_ids != col_ids)
    neg_mask = jnp.logical_not(same)

    neg_inf = jnp.float32(-jnp.inf)
    neg_logits = jnp.where(neg_mask, logits, neg_inf)
    neg_max = jnp.max(neg_logits, axis=-1, keepdims=True)       # (B, 1), -inf if no negs
    has_neg = neg_max > neg_inf
    neg_max_safe = jnp.where(has_neg, neg_max, 0.0)

    # single exp pass: |logits| <= 1/T, so exp(logits - neg_max_safe) cannot overflow
    E = jnp.exp(logits - neg_max_safe)                          # (B, B)  [EUP]
    S = jnp.sum(jnp.where(neg_mask, E, 0.0), axis=-1, keepdims=True)  # (B, 1)
    # -log(E / (S + E)) = log(S + E) - (logits - neg_max_safe)
    # TODO(synk): at production B, audit whether the B^2 exp + B^2 log saturates the
    # single EUP slot before the MXU; if so overlap the log of tile i with the
    # matmul of tile i+1 in the tiled grid.
    pair_loss = jnp.log(S + E) - (logits - neg_max_safe)        # (B, B)

    loss_sum = jnp.sum(jnp.where(pos_mask, pair_loss, 0.0))
    sum_same = jnp.sum(same.astype(jnp.float32))
    n_pos = sum_same - jnp.float32(B)                           # diagonal is always "same"
    n_neg = jnp.float32(B * B) - sum_same
    valid = jnp.logical_and(n_pos > 0.0, n_neg > 0.0)
    loss_c = jnp.where(valid, loss_sum / jnp.maximum(n_pos, 1.0), 0.0)

    # -------- two supervised cross-entropy heads --------
    ce1 = _ce_row_losses(pred1_ref[...].astype(jnp.float32), lab_col)  # (B, 1)
    ce2 = _ce_row_losses(pred2_ref[...].astype(jnp.float32), lab_col)  # (B, 1)
    loss_1 = jnp.sum(ce1) / jnp.float32(B)
    loss_2 = jnp.sum(ce2) / jnp.float32(B)

    # -------- single lane-dense output slab (one unmasked vst / DMA) --------
    lane = lax.broadcasted_iota(jnp.int32, (1, 128), 1)
    out_ref[...] = jnp.where(
        lane == 0, CONTRASTIVE_WEIGHT * loss_c,
        jnp.where(lane == 1, CLASSIFIER_1_WEIGHT * loss_1,
                  jnp.where(lane == 2, CLASSIFIER_2_WEIGHT * loss_2, 0.0)))


@jax.jit
def hybrid_loss_with_dual_aug(projections, pseudo_labels, predictions1,
                              predictions2, labels):
    B, D = projections.shape
    C = predictions1.shape[1]

    plab = pseudo_labels.astype(jnp.int32).reshape(B)
    lab = labels.astype(jnp.int32).reshape(B)
    plab_row = plab.reshape(1, B)     # lane-dense row for the (B,B) mask
    plab_col = plab.reshape(B, 1)     # column form, derived here (free under jit)
    lab_col = lab.reshape(B, 1)

    # Advisory cost estimate so XLA schedules surrounding ops correctly.
    flops = (2 * B * B * D            # similarity matmul
             + 3 * B * D              # normalization
             + 14 * B * B             # NT-Xent elementwise
             + 2 * 4 * B * C)         # two CE heads
    transcendentals = 2 * B * B + 2 * B * C + 2 * B
    bytes_accessed = (4 * (B * D + 2 * B * C)      # f32 inputs
                      + 4 * (3 * B)                # int32 label tensors
                      + 4 * 128)                   # output slab
    cost = pl.CostEstimate(flops=flops, transcendentals=transcendentals,
                           bytes_accessed=bytes_accessed)

    vmem = pl.BlockSpec(memory_space=pltpu.MemorySpace.VMEM)
    out = pl.pallas_call(
        _hybrid_loss_kernel,
        out_shape=jax.ShapeDtypeStruct((1, 128), jnp.float32),
        in_specs=[vmem, vmem, vmem, vmem, vmem, vmem],
        out_specs=vmem,
        cost_estimate=cost,
    )(projections, predictions1, predictions2, plab_row, plab_col, lab_col)
    return out[0, 0], out[0, 1], out[0, 2]


if __name__ == "__main__":
    key = jax.random.PRNGKey(0)
    k1, k2, k3, k4, k5 = jax.random.split(key, 5)

    B, D, C = 8, 32, 10
    projections = jax.random.normal(k1, (B, D), dtype=jnp.float32)
    pseudo_labels = jax.random.randint(k2, (B,), 0, 4, dtype=jnp.int32)
    predictions1 = jax.random.normal(k3, (B, C), dtype=jnp.float32)
    predictions2 = jax.random.normal(k4, (B, C), dtype=jnp.float32)
    labels = jax.random.randint(k5, (B,), 0, C, dtype=jnp.int32)

    out = hybrid_loss_with_dual_aug(projections, pseudo_labels,
                                    predictions1, predictions2, labels)
    out = jax.block_until_ready(out)
    print("KERNEL_OK")
</pallas_src>

<mosaic_0001>
module attributes {stable_mosaic.version = 11 : i64} {
  func.func @_hybrid_loss_kernel(%arg0: memref<8x32xf32, #tpu.memory_space<vmem>>, %arg1: memref<8x10xf32, #tpu.memory_space<vmem>>, %arg2: memref<8x10xf32, #tpu.memory_space<vmem>>, %arg3: memref<1x8xi32, #tpu.memory_space<vmem>>, %arg4: memref<8x1xi32, #tpu.memory_space<vmem>>, %arg5: memref<8x1xi32, #tpu.memory_space<vmem>>, %arg6: memref<1x128xf32, #tpu.memory_space<vmem>>) attributes {dimension_semantics = [], scalar_prefetch = 0 : i64, scratch_operands = 0 : i64, tpu.core_type = #tpu.core_type<tc>} {
    %c0 = arith.constant 0 : index
    %c0_0 = arith.constant 0 : index
    %0 = vector.load %arg0[%c0, %c0_0] : memref<8x32xf32, #tpu.memory_space<vmem>>, vector<8x32xf32>
    %c0_1 = arith.constant 0 : index
    %c0_2 = arith.constant 0 : index
    %1 = vector.load %arg3[%c0_1, %c0_2] : memref<1x8xi32, #tpu.memory_space<vmem>>, vector<1x8xi32>
    %c0_3 = arith.constant 0 : index
    %c0_4 = arith.constant 0 : index
    %2 = vector.load %arg4[%c0_3, %c0_4] : memref<8x1xi32, #tpu.memory_space<vmem>>, vector<8x1xi32>
    %c0_5 = arith.constant 0 : index
    %c0_6 = arith.constant 0 : index
    %3 = vector.load %arg5[%c0_5, %c0_6] : memref<8x1xi32, #tpu.memory_space<vmem>>, vector<8x1xi32>
    %4 = arith.mulf %0, %0 : vector<8x32xf32>
    %cst = arith.constant dense<0.000000e+00> : vector<8xf32>
    %5 = vector.multi_reduction <add>, %4, %cst [1] : vector<8x32xf32> to vector<8xf32>
    %6 = vector.shape_cast %5 : vector<8xf32> to vector<8x1xf32>
    %cst_7 = arith.constant 1.000000e-24 : f32
    %7 = vector.broadcast %cst_7 : f32 to vector<8x1xf32>
    %8 = arith.maximumf %6, %7 : vector<8x1xf32>
    %9 = math.rsqrt %8 : vector<8x1xf32>
    %10 = vector.broadcast %9 : vector<8x1xf32> to vector<8x32xf32>
    %11 = arith.mulf %0, %10 : vector<8x32xf32>
    %12 = arith.truncf %11 : vector<8x32xf32> to vector<8x32xbf16>
    %cst_8 = arith.constant dense<0.000000e+00> : vector<8x8xf32>
    %13 = tpu.matmul %12, %12, %cst_8 {dimension_numbers = #tpu.dot_dimension_numbers<[1], [1], [0], [0], [0, 0, 1, 0], [], []>} : vector<8x32xbf16>, vector<8x32xbf16>, vector<8x8xf32> -> vector<8x8xf32>
    %cst_9 = arith.constant 1.000000e+01 : f32
    %14 = vector.broadcast %cst_9 : f32 to vector<8x8xf32>
    %15 = arith.mulf %13, %14 : vector<8x8xf32>
    %16 = vector.broadcast %2 : vector<8x1xi32> to vector<8x8xi32>
    %17 = vector.broadcast %1 : vector<1x8xi32> to vector<8x8xi32>
    %18 = arith.cmpi eq, %16, %17 : vector<8x8xi32>
    %19 = tpu.iota {dimensions = array<i32: 0>} : vector<8x8xi32>
    %20 = tpu.iota {dimensions = array<i32: 1>} : vector<8x8xi32>
    %21 = arith.cmpi ne, %19, %20 : vector<8x8xi32>
    %22 = arith.andi %18, %21 : vector<8x8xi1>
    %cst_10 = arith.constant dense<true> : vector<8x8xi1>
    %23 = arith.xori %18, %cst_10 : vector<8x8xi1>
    %cst_11 = arith.constant 0xFF800000 : f32
    %24 = vector.broadcast %cst_11 : f32 to vector<8x8xf32>
    %25 = arith.select %23, %15, %24 : vector<8x8xi1>, vector<8x8xf32>
    %cst_12 = arith.constant dense<0xFF800000> : vector<8xf32>
    %26 = vector.multi_reduction <maximumf>, %25, %cst_12 [1] : vector<8x8xf32> to vector<8xf32>
    %27 = vector.shape_cast %26 : vector<8xf32> to vector<8x1xf32>
    %cst_13 = arith.constant 0xFF800000 : f32
    %28 = vector.broadcast %cst_13 : f32 to vector<8x1xf32>
    %29 = arith.cmpf ogt, %27, %28 : vector<8x1xf32>
    %cst_14 = arith.constant 0.000000e+00 : f32
    %30 = vector.broadcast %cst_14 : f32 to vector<8x1xf32>
    %31 = arith.select %29, %27, %30 : vector<8x1xi1>, vector<8x1xf32>
    %32 = vector.broadcast %31 : vector<8x1xf32> to vector<8x8xf32>
    %33 = arith.subf %15, %32 : vector<8x8xf32>
    %34 = math.exp %33 : vector<8x8xf32>
    %cst_15 = arith.constant 0.000000e+00 : f32
    %35 = vector.broadcast %cst_15 : f32 to vector<8x8xf32>
    %36 = arith.select %23, %34, %35 : vector<8x8xi1>, vector<8x8xf32>
    %cst_16 = arith.constant dense<0.000000e+00> : vector<8xf32>
    %37 = vector.multi_reduction <add>, %36, %cst_16 [1] : vector<8x8xf32> to vector<8xf32>
    %38 = vector.shape_cast %37 : vector<8xf32> to vector<8x1xf32>
    %39 = vector.broadcast %38 : vector<8x1xf32> to vector<8x8xf32>
    %40 = arith.addf %39, %34 : vector<8x8xf32>
    %41 = math.log %40 : vector<8x8xf32>
    %42 = vector.broadcast %31 : vector<8x1xf32> to vector<8x8xf32>
    %43 = arith.subf %15, %42 : vector<8x8xf32>
    %44 = arith.subf %41, %43 : vector<8x8xf32>
    %cst_17 = arith.constant 0.000000e+00 : f32
    %45 = vector.broadcast %cst_17 : f32 to vector<8x8xf32>
    %46 = arith.select %22, %44, %45 : vector<8x8xi1>, vector<8x8xf32>
    %47 = vector.shape_cast %46 : vector<8x8xf32> to vector<1x8x8xf32>
    %cst_18 = arith.constant dense<0.000000e+00> : vector<1xf32>
    %48 = vector.multi_reduction <add>, %47, %cst_18 [1, 2] : vector<1x8x8xf32> to vector<1xf32>
    %49 = vector.shape_cast %48 : vector<1xf32> to vector<1x1x1xf32>
    %50 = vector.extract %49[0, 0, 0] : f32 from vector<1x1x1xf32>
    %51 = arith.extui %18 : vector<8x8xi1> to vector<8x8xi32>
    %52 = arith.sitofp %51 : vector<8x8xi32> to vector<8x8xf32>
    %53 = vector.shape_cast %52 : vector<8x8xf32> to vector<1x8x8xf32>
    %cst_19 = arith.constant dense<0.000000e+00> : vector<1xf32>
    %54 = vector.multi_reduction <add>, %53, %cst_19 [1, 2] : vector<1x8x8xf32> to vector<1xf32>
    %55 = vector.shape_cast %54 : vector<1xf32> to vector<1x1x1xf32>
    %56 = vector.extract %55[0, 0, 0] : f32 from vector<1x1x1xf32>
    %cst_20 = arith.constant 8.000000e+00 : f32
    %57 = arith.subf %56, %cst_20 : f32
    %cst_21 = arith.constant 6.400000e+01 : f32
    %58 = arith.subf %cst_21, %56 : f32
    %cst_22 = arith.constant 0.000000e+00 : f32
    %59 = arith.cmpf ogt, %57, %cst_22 : f32
    %cst_23 = arith.constant 0.000000e+00 : f32
    %60 = arith.cmpf ogt, %58, %cst_23 : f32
    %61 = arith.andi %59, %60 : i1
    %cst_24 = arith.constant 1.000000e+00 : f32
    %62 = arith.maximumf %57, %cst_24 : f32
    %63 = arith.divf %50, %62 : f32
    %cst_25 = arith.constant 0.000000e+00 : f32
    %64 = arith.select %61, %63, %cst_25 : f32
    %c0_26 = arith.constant 0 : index
    %c0_27 = arith.constant 0 : index
    %65 = vector.load %arg1[%c0_26, %c0_27] : memref<8x10xf32, #tpu.memory_space<vmem>>, vector<8x10xf32>
    %66 = tpu.iota {dimensions = array<i32: 1>} : vector<8x10xi32>
    %67 = vector.broadcast %3 : vector<8x1xi32> to vector<8x10xi32>
    %68 = arith.cmpi eq, %66, %67 : vector<8x10xi32>
    %69 = arith.extui %68 : vector<8x10xi1> to vector<8x10xi32>
    %70 = arith.sitofp %69 : vector<8x10xi32> to vector<8x10xf32>
    %cst_28 = arith.constant dense<0xFF800000> : vector<8xf32>
    %71 = vector.multi_reduction <maximumf>, %65, %cst_28 [1] : vector<8x10xf32> to vector<8xf32>
    %72 = vector.shape_cast %71 : vector<8xf32> to vector<8x1xf32>
    %73 = vector.broadcast %72 : vector<8x1xf32> to vector<8x10xf32>
    %74 = arith.subf %65, %73 : vector<8x10xf32>
    %75 = math.exp %74 : vector<8x10xf32>
    %cst_29 = arith.constant dense<0.000000e+00> : vector<8xf32>
    %76 = vector.multi_reduction <add>, %75, %cst_29 [1] : vector<8x10xf32> to vector<8xf32>
    %77 = vector.shape_cast %76 : vector<8xf32> to vector<8x1xf32>
    %78 = math.log %77 : vector<8x1xf32>
    %79 = arith.addf %72, %78 : vector<8x1xf32>
    %80 = arith.mulf %65, %70 : vector<8x10xf32>
    %cst_30 = arith.constant dense<0.000000e+00> : vector<8xf32>
    %81 = vector.multi_reduction <add>, %80, %cst_30 [1] : vector<8x10xf32> to vector<8xf32>
    %82 = vector.shape_cast %81 : vector<8xf32> to vector<8x1xf32>
    %83 = arith.subf %79, %82 : vector<8x1xf32>
    %c0_31 = arith.constant 0 : index
    %c0_32 = arith.constant 0 : index
    %84 = vector.load %arg2[%c0_31, %c0_32] : memref<8x10xf32, #tpu.memory_space<vmem>>, vector<8x10xf32>
    %85 = tpu.iota {dimensions = array<i32: 1>} : vector<8x10xi32>
    %86 = vector.broadcast %3 : vector<8x1xi32> to vector<8x10xi32>
    %87 = arith.cmpi eq, %85, %86 : vector<8x10xi32>
    %88 = arith.extui %87 : vector<8x10xi1> to vector<8x10xi32>
    %89 = arith.sitofp %88 : vector<8x10xi32> to vector<8x10xf32>
    %cst_33 = arith.constant dense<0xFF800000> : vector<8xf32>
    %90 = vector.multi_reduction <maximumf>, %84, %cst_33 [1] : vector<8x10xf32> to vector<8xf32>
    %91 = vector.shape_cast %90 : vector<8xf32> to vector<8x1xf32>
    %92 = vector.broadcast %91 : vector<8x1xf32> to vector<8x10xf32>
    %93 = arith.subf %84, %92 : vector<8x10xf32>
    %94 = math.exp %93 : vector<8x10xf32>
    %cst_34 = arith.constant dense<0.000000e+00> : vector<8xf32>
    %95 = vector.multi_reduction <add>, %94, %cst_34 [1] : vector<8x10xf32> to vector<8xf32>
    %96 = vector.shape_cast %95 : vector<8xf32> to vector<8x1xf32>
    %97 = math.log %96 : vector<8x1xf32>
    %98 = arith.addf %91, %97 : vector<8x1xf32>
    %99 = arith.mulf %84, %89 : vector<8x10xf32>
    %cst_35 = arith.constant dense<0.000000e+00> : vector<8xf32>
    %100 = vector.multi_reduction <add>, %99, %cst_35 [1] : vector<8x10xf32> to vector<8xf32>
    %101 = vector.shape_cast %100 : vector<8xf32> to vector<8x1xf32>
    %102 = arith.subf %98, %101 : vector<8x1xf32>
    %103 = vector.shape_cast %83 : vector<8x1xf32> to vector<1x8x1xf32>
    %cst_36 = arith.constant dense<0.000000e+00> : vector<1xf32>
    %104 = vector.multi_reduction <add>, %103, %cst_36 [1, 2] : vector<1x8x1xf32> to vector<1xf32>
    %105 = vector.shape_cast %104 : vector<1xf32> to vector<1x1x1xf32>
    %106 = vector.extract %105[0, 0, 0] : f32 from vector<1x1x1xf32>
    %cst_37 = arith.constant 8.000000e+00 : f32
    %107 = arith.divf %106, %cst_37 : f32
    %108 = vector.shape_cast %102 : vector<8x1xf32> to vector<1x8x1xf32>
    %cst_38 = arith.constant dense<0.000000e+00> : vector<1xf32>
    %109 = vector.multi_reduction <add>, %108, %cst_38 [1, 2] : vector<1x8x1xf32> to vector<1xf32>
    %110 = vector.shape_cast %109 : vector<1xf32> to vector<1x1x1xf32>
    %111 = vector.extract %110[0, 0, 0] : f32 from vector<1x1x1xf32>
    %cst_39 = arith.constant 8.000000e+00 : f32
    %112 = arith.divf %111, %cst_39 : f32
    %113 = tpu.iota {dimensions = array<i32: 1>} : vector<1x128xi32>
    %c0_i32 = arith.constant 0 : i32
    %114 = vector.broadcast %c0_i32 : i32 to vector<1x128xi32>
    %115 = arith.cmpi eq, %113, %114 : vector<1x128xi32>
    %cst_40 = arith.constant 5.000000e-01 : f32
    %116 = arith.mulf %cst_40, %64 : f32
    %c1_i32 = arith.constant 1 : i32
    %117 = vector.broadcast %c1_i32 : i32 to vector<1x128xi32>
    %118 = arith.cmpi eq, %113, %117 : vector<1x128xi32>
    %cst_41 = arith.constant 2.500000e-01 : f32
    %119 = arith.mulf %cst_41, %107 : f32
    %c2_i32 = arith.constant 2 : i32
    %120 = vector.broadcast %c2_i32 : i32 to vector<1x128xi32>
    %121 = arith.cmpi eq, %113, %120 : vector<1x128xi32>
    %cst_42 = arith.constant 2.500000e-01 : f32
    %122 = arith.mulf %cst_42, %112 : f32
    %cst_43 = arith.constant 0.000000e+00 : f32
    %123 = vector.broadcast %122 : f32 to vector<1x128xf32>
    %124 = vector.broadcast %cst_43 : f32 to vector<1x128xf32>
    %125 = arith.select %121, %123, %124 : vector<1x128xi1>, vector<1x128xf32>
    %126 = vector.broadcast %119 : f32 to vector<1x128xf32>
    %127 = arith.select %118, %126, %125 : vector<1x128xi1>, vector<1x128xf32>
    %128 = vector.broadcast %116 : f32 to vector<1x128xf32>
    %129 = arith.select %115, %128, %127 : vector<1x128xi1>, vector<1x128xf32>
    %c0_44 = arith.constant 0 : index
    %c0_45 = arith.constant 0 : index
    %130 = vector.load %arg6[%c0_44, %c0_45] : memref<1x128xf32, #tpu.memory_space<vmem>>, vector<1x128xf32>
    tpu.vector_store %arg6[%c0_44, %c0_45], %129 {strides = array<i32>} : memref<1x128xf32, #tpu.memory_space<vmem>>, vector<1x128xf32>,
    return
  }
}

</mosaic_0001>

<bundles_post_ra>
// kernel: hybrid_loss_with_dual_aug.1
= control target key start
LH: loop header
LB: loop body
LE: loop exit
PB: predicated region body
PF: predicated region fallthrough
CT: control target
= control target key end

     0   :  { %vm29_vm0 = vcmask 261120   ;;  %v283_v3 = vmov 0.0   ;;  %vm284_vm1 = vmmov 0   ;;  %v285_v4 = vmov 0   ;;  %s287_s8 = smov 1.0   ;;  %s411_s0 = inlined_call_operand.vmem [shape: f32[8,32], index: 0, kind: input, shape index: {}]   ;;  %s412_s4 = inlined_call_operand.vmem [shape: s32[8,1], index: 4, kind: input, shape index: {}]   ;;  %s413_s3 = inlined_call_operand.vmem [shape: s32[1,8], index: 3, kind: input, shape index: {}]   ;;  %s414_s1 = inlined_call_operand.vmem [shape: f32[8,10], index: 1, kind: input, shape index: {}]   ;;  %s415_s2 = inlined_call_operand.vmem [shape: f32[8,10], index: 2, kind: input, shape index: {}]   ;;  %s416_s5 = inlined_call_operand.vmem [shape: s32[8,1], index: 5, kind: input, shape index: {}]   ;;  %s417_s6 = inlined_call_operand.vmem [shape: f32[1,128], index: 6, kind: output, shape index: {}]  }
   0x1   :  { %v24_v0 = vld [vmem:[%s411_s0] sm:$0xff]  ;;  %244 = vmatprep.subr.bf16.mxu0 %v283_v3  ;;  %246 = vmatprep.mubr.msk.bf16.mxu0 %vm284_vm1, %v283_v3  ;;  %vm286_vm3 = vmmov 1   ;;  %vm97_vm5 = vcmask 64512   ;;  %vm156_vm6 = vcmask 80896   ;;  %v89_v46 = vlaneseq }
   0x2   :  { %v28_v1 = vmul.f32 %v24_v0, %v24_v0  ;;  %265 = vset.pattern.permute.xlu0 %v285_v4  ;;  %v26_v5 = vld [vmem:[%s412_s4] sm:$0xff]  ;;  %266 = vset.pattern.permute.xlu1 %v285_v4  ;;  %vm192_vm11 = vcmask 7168  }
   0x3   :  { %v337_v12 = vld [vmem:[%s413_s3] ss:$0 sm:$0xff]  ;;  %v374_v49 = vand.u32 127, %v89_v46  ;;  %v90_v55 = vshrl.u32 %v89_v46, 7 }
   0x4   :  { %v30_v2 = vsel %vm29_vm0, %v28_v1, 0.0  ;;  %v149_v21 = vld [vmem:[%s414_s1] sm:$0xff] }
   0x5   :  { %31 = vadd.xlane.f32.xlu0 %v30_v2  ;;  %v157_v23 = vsel %vm156_vm6, %v149_v21, -inf  ;;  %v174_v24 = vld [vmem:[%s415_s2] sm:$0xff]  ;;  %vm93_vm9 = vcmp.ne.s32.totalorder %v90_v55, %v374_v49  ;;  %vm223_vm12 = vcmp.eq.s32.totalorder %v374_v49, 2  ;;  %vm221_vm13 = vcmp.eq.s32.totalorder %v374_v49, 1 }
   0x6   :  { %v175_v25 = vsel %vm156_vm6, %v174_v24, -inf  ;;  %v27_v41 = vld [vmem:[%s416_s5] sm:$0xff]  ;;  %vm219_vm14 = vcmp.eq.s32.totalorder %v374_v49, 0 }
  0x1b   :  { %82 = vperm.xlu0 %265, %v26_v5  }
  0x92   :  { %v32_v6 = vpop.xlane.xlu0 %31 }
  0x93   :  { %v33_v7 = vmax.f32 %v32_v6, 1e-24 }
  0x95   :  { %267 = vrsqrt.f32 %v33_v7 }
  0x9a   :  { %v339_v13 = vpop.permute.xlu0 %82 }
  0x9b   :  { %vm88_vm2 = vcmp.eq.s32.totalorder %v339_v13, %v337_v12 }
  0x9c   :  { %vm346_vm4 = vmxor %vm88_vm2, %vm286_vm3  ;;  %v238_v39 = vsel %vm88_vm2, 1.0, %v283_v3 }
  0x9d   :  { %v127_v40 = vsel %vm97_vm5, %v238_v39, 0.0  ;;  %vm94_vm10 = vmand %vm88_vm2, %vm93_vm9 }
  0x9f   :  { %v268_v8 = vpop.eup %267 }
  0xa0   :  { %v35_v9 = vmul.f32 %v268_v8, %v24_v0 }
  0xa2   :  { %v36_v10 = vpack.c.bf16 %v35_v9, %v35_v9 }
  0xa4   :  { %v38_v11 = vsel %vm29_vm0, %v36_v10, 0 }
  0xa5   :  { %245 = vmatpush3.bf16.xpose.msra.mxu0 %v38_v11 }
  0xac   :  { %247 = vmatmul.mubr.msk.bf16.vlgmr.msra.gmra.mrb[0].mxu0 %vm29_vm0, %v36_v10 }
 0x17f   :  { %v74_v14 = vpop.f32.mrb[0].mxu0 }
 0x180   :  { %v80_v16 = vmul.f32 10.0, %v74_v14  ;;  %v248_v17 = vpop.f32.mrb[1].mxu0 }
 0x181   :  { %v77_v18 = vpop.f32.mrb[2].mxu0 }
 0x182   :  { %v249_v19 = vpop.f32.mrb[3].mxu0  ;;  %v96_v20 = vsel %vm346_vm4, %v80_v16, -inf }
 0x183   :  { %v98_v22 = vsel %vm97_vm5, %v96_v20, -inf }
 0x184   :  { %99 = vmax.xlane.f32.xlu1 %v98_v22 }
 0x188   :  { %158 = vmax.xlane.f32.xlu1 %v157_v23 }
 0x18c   :  { %176 = vmax.xlane.f32.xlu1 %v175_v25 }
 0x211   :  { %v100_v26 = vpop.xlane.xlu1 %99 }
 0x212   :  { %vm101_vm7 = vcmp.gt.f32.partialorder %v100_v26, -inf }
 0x213   :  { %v102_v27 = vsel %vm101_vm7, %v100_v26, 0.0 }
 0x214   :  { %v103_v28 = vsub.f32 %v80_v16, %v102_v27 }
 0x215   :  { %v159_v29 = vpop.xlane.xlu1 %158 }
 0x216   :  { %v104_v30 = vmul.f32 1.442695, %v103_v28  ;;  %v160_v42 = vsub.f32 %v149_v21, %v159_v29 }
 0x218   :  { %269 = vpow2.f32 %v104_v30  ;;  %v161_v43 = vmul.f32 1.442695, %v160_v42 }
 0x219   :  { %v177_v31 = vpop.xlane.xlu1 %176 }
 0x21a   :  { %v178_v32 = vsub.f32 %v174_v24, %v177_v31 }
 0x21c   :  { %v179_v33 = vmul.f32 1.442695, %v178_v32 }
 0x21e   :  { %271 = vpow2.f32 %v179_v33 }
 0x21f   :  { %273 = vpow2.f32 %v161_v43 }
 0x222   :  { %v270_v34 = vpop.eup %269 }
 0x223   :  { %v106_v35 = vsel %vm346_vm4, %v270_v34, 0.0 }
 0x224   :  { %v107_v36 = vsel %vm97_vm5, %v106_v35, 0.0 }
 0x225   :  { %108 = vadd.xlane.f32.xlu1 %v107_v36 }
 0x228   :  { %v272_v37 = vpop.eup %271 }
 0x229   :  { %v181_v38 = vsel %vm156_vm6, %v272_v37, 0.0  ;;  %v274_v44 = vpop.eup %273 }
 0x22a   :  { %182 = vadd.xlane.f32.xlu0 %v181_v38  ;;  %v163_v45 = vsel %vm156_vm6, %v274_v44, 0.0 }
 0x22e   :  { %128 = vadd.xlane.f32.xlu0 %v127_v40 }
 0x236   :  { %151 = vperm.xlu1 %266, %v27_v41  }
 0x25a   :  { %164 = vadd.xlane.f32.xlu1 %v163_v45 }
 0x2b2   :  { %v109_v47 = vpop.xlane.xlu1 %108 }
 0x2b3   :  { %v110_v48 = vadd.f32 %v270_v34, %v109_v47 }
 0x2b5   :  { %275 = vlog2.f32 %v110_v48 }
 0x2b6   :  { %v152_v50 = vpop.permute.xlu1 %151 }
 0x2b7   :  { %vm153_vm8 = vcmp.eq.s32.totalorder %v374_v49, %v152_v50  ;;  %v183_v63 = vpop.xlane.xlu0 %182 }
 0x2b8   :  { %v241_v51 = vsel %vm153_vm8, 1.0, %v283_v3 }
 0x2b9   :  { %v169_v52 = vmul.f32 %v241_v51, %v149_v21  ;;  %v187_v54 = vmul.f32 %v241_v51, %v174_v24 }
 0x2bb   :  { %v170_v53 = vsel %vm156_vm6, %v169_v52, 0.0  ;;  %v188_v57 = vsel %vm156_vm6, %v187_v54, 0.0  ;;  %v129_v4 = vpop.xlane.xlu0 %128 }
 0x2bc   :  { %171 = vadd.xlane.f32.xlu1 %v170_v53  ;;  %v130_v8 = vrot.slane %v129_v4, 4 }
 0x2be   :  { %v131_v13 = vadd.f32 %v130_v8, %v129_v4 }
 0x2bf   :  { %v276_v56 = vpop.eup %275 }
 0x2c0   :  { %v112_v58 = vmul.f32 0.6931472, %v276_v56  ;;  %189 = vadd.xlane.f32.xlu1 %v188_v57  ;;  %v132_v15 = vrot.slane %v131_v13, 2 }
 0x2c2   :  { %v113_v59 = vsub.f32 %v112_v58, %v103_v28  ;;  %v133_v19 = vadd.f32 %v132_v15, %v131_v13 }
 0x2c4   :  { %v114_v60 = vsel %vm94_vm10, %v113_v59, 0.0  ;;  %v134_v22 = vrot.slane %v133_v19, 1 }
 0x2c5   :  { %v115_v61 = vsel %vm97_vm5, %v114_v60, 0.0 }
 0x2c6   :  { %116 = vadd.xlane.f32.xlu1 %v115_v61  ;;  %v135_v25 = vadd.f32 %v134_v22, %v133_v19 }
 0x2e7   :  { %v165_v62 = vpop.xlane.xlu1 %164 }
 0x2e8   :  { %277 = vlog2.f32 %v165_v62 }
 0x2e9   :  { %279 = vlog2.f32 %v183_v63 }
 0x2f2   :  { %v278_v0 = vpop.eup %277 }
 0x2f3   :  { %v167_v1 = vmul.f32 0.6931472, %v278_v0  ;;  %v280_v2 = vpop.eup %279 }
 0x2f4   :  { %v185_v3 = vmul.f32 0.6931472, %v280_v2 }
 0x2f5   :  { %v168_v5 = vadd.f32 %v167_v1, %v159_v29 }
 0x2f6   :  { %v186_v9 = vadd.f32 %v185_v3, %v177_v31 }
 0x349   :  { %v172_v6 = vpop.xlane.xlu1 %171 }
 0x34a   :  { %v173_v7 = vsub.f32 %v168_v5, %v172_v6 }
 0x34c   :  { %v193_v10 = vsel %vm192_vm11, %v173_v7, 0.0 }
 0x34d   :  { %v190_v11 = vpop.xlane.xlu1 %189  ;;  %194 = vadd.xlane.f32.xlu1 %v193_v10 }
 0x34e   :  { %v191_v12 = vsub.f32 %v186_v9, %v190_v11 }
 0x350   :  { %v206_v14 = vsel %vm192_vm11, %v191_v12, 0.0 }
 0x351   :  { %207 = vadd.xlane.f32.xlu0 %v206_v14 }
 0x353   :  { %v117_v16 = vpop.xlane.xlu1 %116 }
 0x354   :  { %v118_v17 = vrot.slane %v117_v16, 4 }
 0x356   :  { %v119_v18 = vadd.f32 %v118_v17, %v117_v16 }
 0x358   :  { %v120_v20 = vrot.slane %v119_v18, 2 }
 0x35a   :  { %v121_v21 = vadd.f32 %v120_v20, %v119_v18 }
 0x35c   :  { %v122_v23 = vrot.slane %v121_v21, 1 }
 0x35e   :  { %v123_v24 = vadd.f32 %v122_v23, %v121_v21 }
 0x360   :  { %250 = vpush %v123_v24 }
 0x361   :  { %252 = vpush %v135_v25 }
 0x391   :  { %s385_s5 = spop %250 }
 0x392   :  { %s253_s28 = spop %252 }
 0x393   :  { %s239_s29 = sadd.f32 -8.0, %s253_s28 }
 0x394   :  { %s138_s30 = ssub.f32 64.0, %s253_s28 }
 0x395   :  { %p387_p0 = scmp.gt.f32.partialorder %s239_s29, 0.0  ;;  %s143_s9 = smax.f32 %s287_s8, %s239_s29 }
 0x396   :  { %p391_p1 = scmp.gt.f32.partialorder %s138_s30, 0.0  ;;  %v144_v26 = vstv %s143_s9 }
 0x397   :  { %281 = vrcp.f32 %v144_v26 }
 0x398   :  { %p141_p2 = pnand %p391_p1, %p387_p0 }
 0x3a1   :  { %v282_v27 = vpop.eup %281 }
 0x3a2   :  { %254 = vpush %v282_v27 }
 0x3d3   :  { %s255_s11 = spop %254 }
 0x3d4   :  { %s147_s12 = smul.f32 %s255_s11, %s385_s5 }
 0x3d6   :  { %s423_s12 = smov (%p141_p2, %s147_s12), 0.0 }
 0x3d7   :  { %s220_s15 = smul.f32 0.5, %s423_s12 }
 0x3d9   :  { %v229_v45 = vstv %s220_s15 }
 0x3da   :  { %v195_v28 = vpop.xlane.xlu1 %194 }
 0x3db   :  { %v196_v29 = vrot.slane %v195_v28, 4 }
 0x3dd   :  { %v197_v30 = vadd.f32 %v196_v29, %v195_v28 }
 0x3de   :  { %v208_v31 = vpop.xlane.xlu0 %207 }
 0x3df   :  { %v198_v32 = vrot.slane %v197_v30, 2  ;;  %v209_v33 = vrot.slane %v208_v31, 4 }
 0x3e1   :  { %v199_v34 = vadd.f32 %v198_v32, %v197_v30  ;;  %v210_v35 = vadd.f32 %v209_v33, %v208_v31 }
 0x3e3   :  { %v211_v36 = vrot.slane %v210_v35, 2  ;;  %v200_v37 = vrot.slane %v199_v34, 1 }
 0x3e5   :  { %v212_v38 = vadd.f32 %v211_v36, %v210_v35  ;;  %v201_v39 = vadd.f32 %v200_v37, %v199_v34 }
 0x3e7   :  { %256 = vpush %v201_v39  ;;  %v213_v40 = vrot.slane %v212_v38, 1 }
 0x3e9   :  { %v214_v41 = vadd.f32 %v213_v40, %v212_v38 }
 0x3eb   :  { %258 = vpush %v214_v41 }
 0x418   :  { %s257_s13 = spop %256 }
 0x419   :  { %s205_s14 = smul.f32 0.125, %s257_s13 }
 0x41b   :  { %s222_s18 = smul.f32 0.25, %s205_s14 }
 0x41c   :  { %s259_s16 = spop %258 }
 0x41d   :  { %s218_s17 = smul.f32 0.125, %s259_s16  ;;  %v227_v43 = vstv %s222_s18 }
 0x41f   :  { %s224_s19 = smul.f32 0.25, %s218_s17 }
 0x421   :  { %v225_v42 = vstv %s224_s19 }
 0x422   :  { %v226_v44 = vsel %vm223_vm12, %v225_v42, 0.0 }
 0x423   :  { %v228_v46 = vsel %vm221_vm13, %v227_v43, %v226_v44 }
 0x424   :  { %v230_v47 = vsel %vm219_vm14, %v229_v45, %v228_v46 }
 0x425   :  { %231 = vst [vmem:[%s417_s6] sm:$0x1] %v230_v47 }

</bundles_post_ra>
